<compile_context>
chip_gen: v5e
topology: v5e:2x2
jax: 0.10.0
libtpu: 0.0.40
codegen_flags: <defaults>
</compile_context>

<pallas_src>
import jax
import jax.numpy as jnp
from jax import lax
from jax.experimental import pallas as pl
from jax.experimental.pallas import tpu as pltpu

VOCAB = 10
EMB = 12
HID = 12

# ---- packed-parameter slab layout (rows 8-aligned; cols = 3*HID = 36) ----
ROW_EMB = 0      # (VOCAB, EMB)   cols 0:EMB
ROW_WIH = 16     # (EMB,  3H)
ROW_WHH = 32     # (HID,  3H)
ROW_BIH = 48     # (1,    3H)
ROW_BHH = 49     # (1,    3H)
ROW_WFC = 56     # (HID,  VOCAB)  cols 0:VOCAB
ROW_BFC = 72     # (1,    VOCAB)  cols 0:VOCAB
PARAM_ROWS = 80
PARAM_COLS = 3 * HID


def decoder_kernel(idx_ref, h0_ref, p_ref, out_ref):
    """Gridless: embedding+ReLU (hoisted), serial GRU, time-sum, FC, packed store."""
    H = HID
    V = VOCAB
    B = h0_ref.shape[0]
    TB = idx_ref.shape[0]
    T = TB // B

    # ---------- unpack the single parameter slab (static slices, off-chain) ----------
    emb = p_ref[ROW_EMB:ROW_EMB + V, :EMB]            # (V, E)
    wih = p_ref[ROW_WIH:ROW_WIH + EMB, :]              # (E, 3H)
    whh = p_ref[ROW_WHH:ROW_WHH + H, :]                # (H, 3H)
    bih = p_ref[ROW_BIH:ROW_BIH + 1, :]                # (1, 3H)
    bhh = p_ref[ROW_BHH:ROW_BHH + 1, :]                # (1, 3H)
    wfc = p_ref[ROW_WFC:ROW_WFC + H, :V]               # (H, V)
    bfc = p_ref[ROW_BFC:ROW_BFC + 1, :V]               # (1, V)

    # ---------- one-time, off-critical-path precompute ----------
    # relu(onehot @ emb) == onehot @ relu(emb): ReLU the table once, fold the
    # input projection: W_x = relu(emb) @ W_ih^T.
    wx = jnp.dot(jnp.maximum(emb, 0.0), wih,
                 preferred_element_type=jnp.float32)                    # (V, 3H)

    # Time-major one-hot (row j = t*B + b) built in-kernel from raw int32 tokens.
    idx = idx_ref[...]                                                  # (T*B, 1)
    onehot = (lax.broadcasted_iota(jnp.int32, (TB, V), 1) == idx
              ).astype(jnp.float32)                                     # (T*B, V)

    # Fold b_ih (all gates) + b_hh (r,z gates only) into the hoisted gi bias;
    # the n-gate hh bias stays inside the r*( . ) term (PyTorch GRU semantics).
    lane = lax.broadcasted_iota(jnp.int32, (1, 3 * H), 1)
    bias_gi = bih + jnp.where(lane < 2 * H, bhh, 0.0)
    bhh_n = bhh[:, 2 * H:]                                              # (1, H)

    # gi for every (t, b) in ONE matmul; the loop only takes contiguous slices.
    gi_all = jnp.dot(onehot, wx,
                     preferred_element_type=jnp.float32) + bias_gi      # (T*B, 3H)

    # ---------- serial GRU recurrence (the latency-bound chain) ----------
    h = h0_ref[...]                                                     # (B, H)
    s = jnp.zeros_like(h)
    for t in range(T):                                                  # static, fully unrolled
        gi_t = gi_all[t * B:(t + 1) * B, :]          # contiguous static slice, off-chain
        gh = jnp.dot(h, whh, preferred_element_type=jnp.float32)        # (B, 3H)
        x_rz = gi_t[:, :2 * H] + gh[:, :2 * H]
        # fused r|z sigmoid: exp (EUP) + exact reciprocal; approx=True rejected
        # to hold the 1e-4 tolerance over 8 recurrent steps.
        rz = pl.reciprocal(1.0 + jnp.exp(-x_rz), approx=False)
        r = rz[:, :H]
        z = rz[:, H:2 * H]
        # (gh_n + bhh_n) overlaps with the sigmoid latency -> not on the chain.
        n = jnp.tanh(gi_t[:, 2 * H:] + r * (gh[:, 2 * H:] + bhh_n))
        h = n + z * (h - n)                                             # == (1-z)*n + z*h
        s = s + h

    # ---------- epilogue: time-sum already in s; final Linear; packed store ----------
    logits = jnp.dot(s, wfc, preferred_element_type=jnp.float32) + bfc  # (B, V)
    out_ref[:, :V] = logits
    out_ref[:, V:] = h


def decoder_forward(x_idx, h_n, packed_params):
    """x_idx: (B, T) int32 tokens; h_n: (1, B, HID) f32; packed_params: (80, 36) f32."""
    B, T = x_idx.shape
    # Time-major token column (row j = t*B + b): 64-byte layout reshuffle in the
    # wrapper, buys contiguous per-step gi slices inside the unrolled recurrence.
    idx_col = x_idx.T.reshape(T * B, 1).astype(jnp.int32)
    h0 = h_n[0]                                                         # (B, HID)

    vmem = pl.BlockSpec(memory_space=pltpu.MemorySpace.VMEM)
    packed_out = pl.pallas_call(
        decoder_kernel,
        out_shape=jax.ShapeDtypeStruct((B, VOCAB + HID), jnp.float32),
        in_specs=[vmem, vmem, vmem],
        out_specs=vmem,
    )(idx_col, h0, packed_params)

    out = packed_out[:, :VOCAB]
    hn = packed_out[:, VOCAB:]
    return out, hn[None]


def init_params(key):
    """Deterministic synthetic parameters with PyTorch-default shapes (pre-transposed)."""
    ks = jax.random.split(key, 7)
    bound_gru = 1.0 / jnp.sqrt(HID)
    bound_fc = 1.0 / jnp.sqrt(EMB)
    u = lambda k, shape, b: jax.random.uniform(k, shape, jnp.float32, -b, b)
    wih = u(ks[1], (3 * HID, EMB), bound_gru)     # PyTorch weight_ih_l0 (3H, E)
    whh = u(ks[2], (3 * HID, HID), bound_gru)     # PyTorch weight_hh_l0 (3H, H)
    wfc = u(ks[5], (VOCAB, EMB), bound_fc)        # PyTorch fc.weight (10, 12)
    return {
        "emb": jax.random.normal(ks[0], (VOCAB, EMB), jnp.float32),
        "wih_t": wih.T,                           # (E, 3H)
        "whh_t": whh.T,                           # (H, 3H)
        "bih": u(ks[3], (1, 3 * HID), bound_gru),
        "bhh": u(ks[4], (1, 3 * HID), bound_gru),
        "wfc_t": wfc.T,                           # (H, VOCAB)
        "bfc": u(ks[6], (1, VOCAB), bound_fc),
    }


def pack_params(p):
    """One-time (init) packing of all parameters into a single f32 slab."""
    slab = jnp.zeros((PARAM_ROWS, PARAM_COLS), jnp.float32)
    slab = slab.at[ROW_EMB:ROW_EMB + VOCAB, :EMB].set(p["emb"])
    slab = slab.at[ROW_WIH:ROW_WIH + EMB, :].set(p["wih_t"])
    slab = slab.at[ROW_WHH:ROW_WHH + HID, :].set(p["whh_t"])
    slab = slab.at[ROW_BIH, :].set(p["bih"][0])
    slab = slab.at[ROW_BHH, :].set(p["bhh"][0])
    slab = slab.at[ROW_WFC:ROW_WFC + HID, :VOCAB].set(p["wfc_t"])
    slab = slab.at[ROW_BFC, :VOCAB].set(p["bfc"][0])
    return slab


def decoder_reference(x_idx, h_n, p):
    """Pure-JAX reference of the PyTorch forward, for validation."""
    x = jnp.maximum(p["emb"][x_idx], 0.0)          # (B, T, E)
    h = h_n[0]
    H = HID
    outs = []
    for t in range(x.shape[1]):
        gi = x[:, t, :] @ p["wih_t"] + p["bih"]
        gh = h @ p["whh_t"] + p["bhh"]
        r = jax.nn.sigmoid(gi[:, :H] + gh[:, :H])
        z = jax.nn.sigmoid(gi[:, H:2 * H] + gh[:, H:2 * H])
        n = jnp.tanh(gi[:, 2 * H:] + r * gh[:, 2 * H:])
        h = (1.0 - z) * n + z * h
        outs.append(h)
    summed = jnp.sum(jnp.stack(outs, axis=1), axis=1)
    return summed @ p["wfc_t"] + p["bfc"], h[None]


if __name__ == "__main__":
    key = jax.random.PRNGKey(0)
    k_p, k_x, k_h = jax.random.split(key, 3)

    B, T = 2, 8
    params = init_params(k_p)
    packed = pack_params(params)
    x_idx = jax.random.randint(k_x, (B, T), 0, VOCAB, dtype=jnp.int32)
    h_n = jax.random.normal(k_h, (1, B, HID), jnp.float32)

    out, hn = jax.jit(decoder_forward)(x_idx, h_n, packed)
    out = jax.block_until_ready(out)
    hn = jax.block_until_ready(hn)

    out_ref, hn_ref = decoder_reference(x_idx, h_n, params)
    assert out.shape == (B, VOCAB) and hn.shape == (1, B, HID)
    assert jnp.allclose(out, out_ref, atol=1e-4, rtol=1e-4)
    assert jnp.allclose(hn, hn_ref, atol=1e-4, rtol=1e-4)

    print("KERNEL_OK")
</pallas_src>

<mosaic_0001>
module attributes {stable_mosaic.version = 11 : i64} {
  func.func @decoder_kernel(%arg0: memref<16x1xi32, #tpu.memory_space<vmem>>, %arg1: memref<2x12xf32, #tpu.memory_space<vmem>>, %arg2: memref<80x36xf32, #tpu.memory_space<vmem>>, %arg3: memref<2x22xf32, #tpu.memory_space<vmem>>) attributes {dimension_semantics = [], scalar_prefetch = 0 : i64, scratch_operands = 0 : i64, tpu.core_type = #tpu.core_type<tc>} {
    %c0 = arith.constant 0 : index
    %c0_0 = arith.constant 0 : index
    %0 = vector.load %arg2[%c0, %c0_0] : memref<80x36xf32, #tpu.memory_space<vmem>>, vector<10x12xf32>
    %c16 = arith.constant 16 : index
    %c0_1 = arith.constant 0 : index
    %1 = vector.load %arg2[%c16, %c0_1] : memref<80x36xf32, #tpu.memory_space<vmem>>, vector<12x36xf32>
    %c32 = arith.constant 32 : index
    %c0_2 = arith.constant 0 : index
    %2 = vector.load %arg2[%c32, %c0_2] : memref<80x36xf32, #tpu.memory_space<vmem>>, vector<12x36xf32>
    %c48 = arith.constant 48 : index
    %c0_3 = arith.constant 0 : index
    %3 = vector.load %arg2[%c48, %c0_3] : memref<80x36xf32, #tpu.memory_space<vmem>>, vector<1x36xf32>
    %c49 = arith.constant 49 : index
    %c0_4 = arith.constant 0 : index
    %4 = vector.load %arg2[%c49, %c0_4] : memref<80x36xf32, #tpu.memory_space<vmem>>, vector<1x36xf32>
    %c56 = arith.constant 56 : index
    %c0_5 = arith.constant 0 : index
    %5 = vector.load %arg2[%c56, %c0_5] : memref<80x36xf32, #tpu.memory_space<vmem>>, vector<12x10xf32>
    %c72 = arith.constant 72 : index
    %c0_6 = arith.constant 0 : index
    %6 = vector.load %arg2[%c72, %c0_6] : memref<80x36xf32, #tpu.memory_space<vmem>>, vector<1x10xf32>
    %cst = arith.constant 0.000000e+00 : f32
    %7 = vector.broadcast %cst : f32 to vector<10x12xf32>
    %8 = arith.maximumf %0, %7 : vector<10x12xf32>
    %cst_7 = arith.constant dense<0.000000e+00> : vector<10x36xf32>
    %9 = tpu.matmul %8, %1, %cst_7 {dimension_numbers = #tpu.dot_dimension_numbers<[1], [0], [0], [1], [0, 0, 1, 1], [], []>} : vector<10x12xf32>, vector<12x36xf32>, vector<10x36xf32> -> vector<10x36xf32>
    %c0_8 = arith.constant 0 : index
    %c0_9 = arith.constant 0 : index
    %10 = vector.load %arg0[%c0_8, %c0_9] : memref<16x1xi32, #tpu.memory_space<vmem>>, vector<16x1xi32>
    %11 = tpu.iota {dimensions = array<i32: 1>} : vector<16x10xi32>
    %12 = vector.broadcast %10 : vector<16x1xi32> to vector<16x10xi32>
    %13 = arith.cmpi eq, %11, %12 : vector<16x10xi32>
    %14 = arith.extui %13 : vector<16x10xi1> to vector<16x10xi32>
    %15 = arith.sitofp %14 : vector<16x10xi32> to vector<16x10xf32>
    %16 = tpu.iota {dimensions = array<i32: 1>} : vector<1x36xi32>
    %c24_i32 = arith.constant 24 : i32
    %17 = vector.broadcast %c24_i32 : i32 to vector<1x36xi32>
    %18 = arith.cmpi slt, %16, %17 : vector<1x36xi32>
    %cst_10 = arith.constant 0.000000e+00 : f32
    %19 = vector.broadcast %cst_10 : f32 to vector<1x36xf32>
    %20 = arith.select %18, %4, %19 : vector<1x36xi1>, vector<1x36xf32>
    %21 = arith.addf %3, %20 : vector<1x36xf32>
    %22 = vector.extract_strided_slice %4 {offsets = [0, 24], sizes = [1, 12], strides = [1, 1]} : vector<1x36xf32> to vector<1x12xf32>
    %cst_11 = arith.constant dense<0.000000e+00> : vector<16x36xf32>
    %23 = tpu.matmul %15, %9, %cst_11 {dimension_numbers = #tpu.dot_dimension_numbers<[1], [0], [0], [1], [0, 0, 1, 1], [], []>} : vector<16x10xf32>, vector<10x36xf32>, vector<16x36xf32> -> vector<16x36xf32>
    %24 = vector.broadcast %21 : vector<1x36xf32> to vector<16x36xf32>
    %25 = arith.addf %23, %24 : vector<16x36xf32>
    %c0_12 = arith.constant 0 : index
    %c0_13 = arith.constant 0 : index
    %26 = vector.load %arg1[%c0_12, %c0_13] : memref<2x12xf32, #tpu.memory_space<vmem>>, vector<2x12xf32>
    %cst_14 = arith.constant 0.000000e+00 : f32
    %27 = vector.broadcast %cst_14 : f32 to vector<2x12xf32>
    %28 = vector.extract_strided_slice %25 {offsets = [0, 0], sizes = [2, 36], strides = [1, 1]} : vector<16x36xf32> to vector<2x36xf32>
    %cst_15 = arith.constant dense<0.000000e+00> : vector<2x36xf32>
    %29 = tpu.matmul %26, %2, %cst_15 {dimension_numbers = #tpu.dot_dimension_numbers<[1], [0], [0], [1], [0, 0, 1, 1], [], []>} : vector<2x12xf32>, vector<12x36xf32>, vector<2x36xf32> -> vector<2x36xf32>
    %30 = vector.extract_strided_slice %28 {offsets = [0, 0], sizes = [2, 24], strides = [1, 1]} : vector<2x36xf32> to vector<2x24xf32>
    %31 = vector.extract_strided_slice %29 {offsets = [0, 0], sizes = [2, 24], strides = [1, 1]} : vector<2x36xf32> to vector<2x24xf32>
    %32 = arith.addf %30, %31 : vector<2x24xf32>
    %cst_16 = arith.constant 0.000000e+00 : f32
    %33 = vector.broadcast %cst_16 : f32 to vector<2x24xf32>
    %34 = arith.subf %33, %32 : vector<2x24xf32>
    %35 = math.exp %34 : vector<2x24xf32>
    %cst_17 = arith.constant 1.000000e+00 : f32
    %36 = vector.broadcast %cst_17 : f32 to vector<2x24xf32>
    %37 = arith.addf %36, %35 : vector<2x24xf32>
    %38 = tpu.reciprocal %37 : vector<2x24xf32> -> vector<2x24xf32>
    %39 = vector.extract_strided_slice %38 {offsets = [0, 0], sizes = [2, 12], strides = [1, 1]} : vector<2x24xf32> to vector<2x12xf32>
    %40 = vector.extract_strided_slice %38 {offsets = [0, 12], sizes = [2, 12], strides = [1, 1]} : vector<2x24xf32> to vector<2x12xf32>
    %41 = vector.extract_strided_slice %28 {offsets = [0, 24], sizes = [2, 12], strides = [1, 1]} : vector<2x36xf32> to vector<2x12xf32>
    %42 = vector.extract_strided_slice %29 {offsets = [0, 24], sizes = [2, 12], strides = [1, 1]} : vector<2x36xf32> to vector<2x12xf32>
    %43 = vector.broadcast %22 : vector<1x12xf32> to vector<2x12xf32>
    %44 = arith.addf %42, %43 : vector<2x12xf32>
    %45 = arith.mulf %39, %44 : vector<2x12xf32>
    %46 = arith.addf %41, %45 : vector<2x12xf32>
    %47 = math.tanh %46 : vector<2x12xf32>
    %48 = arith.subf %26, %47 : vector<2x12xf32>
    %49 = arith.mulf %40, %48 : vector<2x12xf32>
    %50 = arith.addf %47, %49 : vector<2x12xf32>
    %51 = arith.addf %27, %50 : vector<2x12xf32>
    %52 = vector.extract_strided_slice %25 {offsets = [2, 0], sizes = [2, 36], strides = [1, 1]} : vector<16x36xf32> to vector<2x36xf32>
    %cst_18 = arith.constant dense<0.000000e+00> : vector<2x36xf32>
    %53 = tpu.matmul %50, %2, %cst_18 {dimension_numbers = #tpu.dot_dimension_numbers<[1], [0], [0], [1], [0, 0, 1, 1], [], []>} : vector<2x12xf32>, vector<12x36xf32>, vector<2x36xf32> -> vector<2x36xf32>
    %54 = vector.extract_strided_slice %52 {offsets = [0, 0], sizes = [2, 24], strides = [1, 1]} : vector<2x36xf32> to vector<2x24xf32>
    %55 = vector.extract_strided_slice %53 {offsets = [0, 0], sizes = [2, 24], strides = [1, 1]} : vector<2x36xf32> to vector<2x24xf32>
    %56 = arith.addf %54, %55 : vector<2x24xf32>
    %cst_19 = arith.constant 0.000000e+00 : f32
    %57 = vector.broadcast %cst_19 : f32 to vector<2x24xf32>
    %58 = arith.subf %57, %56 : vector<2x24xf32>
    %59 = math.exp %58 : vector<2x24xf32>
    %cst_20 = arith.constant 1.000000e+00 : f32
    %60 = vector.broadcast %cst_20 : f32 to vector<2x24xf32>
    %61 = arith.addf %60, %59 : vector<2x24xf32>
    %62 = tpu.reciprocal %61 : vector<2x24xf32> -> vector<2x24xf32>
    %63 = vector.extract_strided_slice %62 {offsets = [0, 0], sizes = [2, 12], strides = [1, 1]} : vector<2x24xf32> to vector<2x12xf32>
    %64 = vector.extract_strided_slice %62 {offsets = [0, 12], sizes = [2, 12], strides = [1, 1]} : vector<2x24xf32> to vector<2x12xf32>
    %65 = vector.extract_strided_slice %52 {offsets = [0, 24], sizes = [2, 12], strides = [1, 1]} : vector<2x36xf32> to vector<2x12xf32>
    %66 = vector.extract_strided_slice %53 {offsets = [0, 24], sizes = [2, 12], strides = [1, 1]} : vector<2x36xf32> to vector<2x12xf32>
    %67 = vector.broadcast %22 : vector<1x12xf32> to vector<2x12xf32>
    %68 = arith.addf %66, %67 : vector<2x12xf32>
    %69 = arith.mulf %63, %68 : vector<2x12xf32>
    %70 = arith.addf %65, %69 : vector<2x12xf32>
    %71 = math.tanh %70 : vector<2x12xf32>
    %72 = arith.subf %50, %71 : vector<2x12xf32>
    %73 = arith.mulf %64, %72 : vector<2x12xf32>
    %74 = arith.addf %71, %73 : vector<2x12xf32>
    %75 = arith.addf %51, %74 : vector<2x12xf32>
    %76 = vector.extract_strided_slice %25 {offsets = [4, 0], sizes = [2, 36], strides = [1, 1]} : vector<16x36xf32> to vector<2x36xf32>
    %cst_21 = arith.constant dense<0.000000e+00> : vector<2x36xf32>
    %77 = tpu.matmul %74, %2, %cst_21 {dimension_numbers = #tpu.dot_dimension_numbers<[1], [0], [0], [1], [0, 0, 1, 1], [], []>} : vector<2x12xf32>, vector<12x36xf32>, vector<2x36xf32> -> vector<2x36xf32>
    %78 = vector.extract_strided_slice %76 {offsets = [0, 0], sizes = [2, 24], strides = [1, 1]} : vector<2x36xf32> to vector<2x24xf32>
    %79 = vector.extract_strided_slice %77 {offsets = [0, 0], sizes = [2, 24], strides = [1, 1]} : vector<2x36xf32> to vector<2x24xf32>
    %80 = arith.addf %78, %79 : vector<2x24xf32>
    %cst_22 = arith.constant 0.000000e+00 : f32
    %81 = vector.broadcast %cst_22 : f32 to vector<2x24xf32>
    %82 = arith.subf %81, %80 : vector<2x24xf32>
    %83 = math.exp %82 : vector<2x24xf32>
    %cst_23 = arith.constant 1.000000e+00 : f32
    %84 = vector.broadcast %cst_23 : f32 to vector<2x24xf32>
    %85 = arith.addf %84, %83 : vector<2x24xf32>
    %86 = tpu.reciprocal %85 : vector<2x24xf32> -> vector<2x24xf32>
    %87 = vector.extract_strided_slice %86 {offsets = [0, 0], sizes = [2, 12], strides = [1, 1]} : vector<2x24xf32> to vector<2x12xf32>
    %88 = vector.extract_strided_slice %86 {offsets = [0, 12], sizes = [2, 12], strides = [1, 1]} : vector<2x24xf32> to vector<2x12xf32>
    %89 = vector.extract_strided_slice %76 {offsets = [0, 24], sizes = [2, 12], strides = [1, 1]} : vector<2x36xf32> to vector<2x12xf32>
    %90 = vector.extract_strided_slice %77 {offsets = [0, 24], sizes = [2, 12], strides = [1, 1]} : vector<2x36xf32> to vector<2x12xf32>
    %91 = vector.broadcast %22 : vector<1x12xf32> to vector<2x12xf32>
    %92 = arith.addf %90, %91 : vector<2x12xf32>
    %93 = arith.mulf %87, %92 : vector<2x12xf32>
    %94 = arith.addf %89, %93 : vector<2x12xf32>
    %95 = math.tanh %94 : vector<2x12xf32>
    %96 = arith.subf %74, %95 : vector<2x12xf32>
    %97 = arith.mulf %88, %96 : vector<2x12xf32>
    %98 = arith.addf %95, %97 : vector<2x12xf32>
    %99 = arith.addf %75, %98 : vector<2x12xf32>
    %100 = vector.extract_strided_slice %25 {offsets = [6, 0], sizes = [2, 36], strides = [1, 1]} : vector<16x36xf32> to vector<2x36xf32>
    %cst_24 = arith.constant dense<0.000000e+00> : vector<2x36xf32>
    %101 = tpu.matmul %98, %2, %cst_24 {dimension_numbers = #tpu.dot_dimension_numbers<[1], [0], [0], [1], [0, 0, 1, 1], [], []>} : vector<2x12xf32>, vector<12x36xf32>, vector<2x36xf32> -> vector<2x36xf32>
    %102 = vector.extract_strided_slice %100 {offsets = [0, 0], sizes = [2, 24], strides = [1, 1]} : vector<2x36xf32> to vector<2x24xf32>
    %103 = vector.extract_strided_slice %101 {offsets = [0, 0], sizes = [2, 24], strides = [1, 1]} : vector<2x36xf32> to vector<2x24xf32>
    %104 = arith.addf %102, %103 : vector<2x24xf32>
    %cst_25 = arith.constant 0.000000e+00 : f32
    %105 = vector.broadcast %cst_25 : f32 to vector<2x24xf32>
    %106 = arith.subf %105, %104 : vector<2x24xf32>
    %107 = math.exp %106 : vector<2x24xf32>
    %cst_26 = arith.constant 1.000000e+00 : f32
    %108 = vector.broadcast %cst_26 : f32 to vector<2x24xf32>
    %109 = arith.addf %108, %107 : vector<2x24xf32>
    %110 = tpu.reciprocal %109 : vector<2x24xf32> -> vector<2x24xf32>
    %111 = vector.extract_strided_slice %110 {offsets = [0, 0], sizes = [2, 12], strides = [1, 1]} : vector<2x24xf32> to vector<2x12xf32>
    %112 = vector.extract_strided_slice %110 {offsets = [0, 12], sizes = [2, 12], strides = [1, 1]} : vector<2x24xf32> to vector<2x12xf32>
    %113 = vector.extract_strided_slice %100 {offsets = [0, 24], sizes = [2, 12], strides = [1, 1]} : vector<2x36xf32> to vector<2x12xf32>
    %114 = vector.extract_strided_slice %101 {offsets = [0, 24], sizes = [2, 12], strides = [1, 1]} : vector<2x36xf32> to vector<2x12xf32>
    %115 = vector.broadcast %22 : vector<1x12xf32> to vector<2x12xf32>
    %116 = arith.addf %114, %115 : vector<2x12xf32>
    %117 = arith.mulf %111, %116 : vector<2x12xf32>
    %118 = arith.addf %113, %117 : vector<2x12xf32>
    %119 = math.tanh %118 : vector<2x12xf32>
    %120 = arith.subf %98, %119 : vector<2x12xf32>
    %121 = arith.mulf %112, %120 : vector<2x12xf32>
    %122 = arith.addf %119, %121 : vector<2x12xf32>
    %123 = arith.addf %99, %122 : vector<2x12xf32>
    %124 = vector.extract_strided_slice %25 {offsets = [8, 0], sizes = [2, 36], strides = [1, 1]} : vector<16x36xf32> to vector<2x36xf32>
    %cst_27 = arith.constant dense<0.000000e+00> : vector<2x36xf32>
    %125 = tpu.matmul %122, %2, %cst_27 {dimension_numbers = #tpu.dot_dimension_numbers<[1], [0], [0], [1], [0, 0, 1, 1], [], []>} : vector<2x12xf32>, vector<12x36xf32>, vector<2x36xf32> -> vector<2x36xf32>
    %126 = vector.extract_strided_slice %124 {offsets = [0, 0], sizes = [2, 24], strides = [1, 1]} : vector<2x36xf32> to vector<2x24xf32>
    %127 = vector.extract_strided_slice %125 {offsets = [0, 0], sizes = [2, 24], strides = [1, 1]} : vector<2x36xf32> to vector<2x24xf32>
    %128 = arith.addf %126, %127 : vector<2x24xf32>
    %cst_28 = arith.constant 0.000000e+00 : f32
    %129 = vector.broadcast %cst_28 : f32 to vector<2x24xf32>
    %130 = arith.subf %129, %128 : vector<2x24xf32>
    %131 = math.exp %130 : vector<2x24xf32>
    %cst_29 = arith.constant 1.000000e+00 : f32
    %132 = vector.broadcast %cst_29 : f32 to vector<2x24xf32>
    %133 = arith.addf %132, %131 : vector<2x24xf32>
    %134 = tpu.reciprocal %133 : vector<2x24xf32> -> vector<2x24xf32>
    %135 = vector.extract_strided_slice %134 {offsets = [0, 0], sizes = [2, 12], strides = [1, 1]} : vector<2x24xf32> to vector<2x12xf32>
    %136 = vector.extract_strided_slice %134 {offsets = [0, 12], sizes = [2, 12], strides = [1, 1]} : vector<2x24xf32> to vector<2x12xf32>
    %137 = vector.extract_strided_slice %124 {offsets = [0, 24], sizes = [2, 12], strides = [1, 1]} : vector<2x36xf32> to vector<2x12xf32>
    %138 = vector.extract_strided_slice %125 {offsets = [0, 24], sizes = [2, 12], strides = [1, 1]} : vector<2x36xf32> to vector<2x12xf32>
    %139 = vector.broadcast %22 : vector<1x12xf32> to vector<2x12xf32>
    %140 = arith.addf %138, %139 : vector<2x12xf32>
    %141 = arith.mulf %135, %140 : vector<2x12xf32>
    %142 = arith.addf %137, %141 : vector<2x12xf32>
    %143 = math.tanh %142 : vector<2x12xf32>
    %144 = arith.subf %122, %143 : vector<2x12xf32>
    %145 = arith.mulf %136, %144 : vector<2x12xf32>
    %146 = arith.addf %143, %145 : vector<2x12xf32>
    %147 = arith.addf %123, %146 : vector<2x12xf32>
    %148 = vector.extract_strided_slice %25 {offsets = [10, 0], sizes = [2, 36], strides = [1, 1]} : vector<16x36xf32> to vector<2x36xf32>
    %cst_30 = arith.constant dense<0.000000e+00> : vector<2x36xf32>
    %149 = tpu.matmul %146, %2, %cst_30 {dimension_numbers = #tpu.dot_dimension_numbers<[1], [0], [0], [1], [0, 0, 1, 1], [], []>} : vector<2x12xf32>, vector<12x36xf32>, vector<2x36xf32> -> vector<2x36xf32>
    %150 = vector.extract_strided_slice %148 {offsets = [0, 0], sizes = [2, 24], strides = [1, 1]} : vector<2x36xf32> to vector<2x24xf32>
    %151 = vector.extract_strided_slice %149 {offsets = [0, 0], sizes = [2, 24], strides = [1, 1]} : vector<2x36xf32> to vector<2x24xf32>
    %152 = arith.addf %150, %151 : vector<2x24xf32>
    %cst_31 = arith.constant 0.000000e+00 : f32
    %153 = vector.broadcast %cst_31 : f32 to vector<2x24xf32>
    %154 = arith.subf %153, %152 : vector<2x24xf32>
    %155 = math.exp %154 : vector<2x24xf32>
    %cst_32 = arith.constant 1.000000e+00 : f32
    %156 = vector.broadcast %cst_32 : f32 to vector<2x24xf32>
    %157 = arith.addf %156, %155 : vector<2x24xf32>
    %158 = tpu.reciprocal %157 : vector<2x24xf32> -> vector<2x24xf32>
    %159 = vector.extract_strided_slice %158 {offsets = [0, 0], sizes = [2, 12], strides = [1, 1]} : vector<2x24xf32> to vector<2x12xf32>
    %160 = vector.extract_strided_slice %158 {offsets = [0, 12], sizes = [2, 12], strides = [1, 1]} : vector<2x24xf32> to vector<2x12xf32>
    %161 = vector.extract_strided_slice %148 {offsets = [0, 24], sizes = [2, 12], strides = [1, 1]} : vector<2x36xf32> to vector<2x12xf32>
    %162 = vector.extract_strided_slice %149 {offsets = [0, 24], sizes = [2, 12], strides = [1, 1]} : vector<2x36xf32> to vector<2x12xf32>
    %163 = vector.broadcast %22 : vector<1x12xf32> to vector<2x12xf32>
    %164 = arith.addf %162, %163 : vector<2x12xf32>
    %165 = arith.mulf %159, %164 : vector<2x12xf32>
    %166 = arith.addf %161, %165 : vector<2x12xf32>
    %167 = math.tanh %166 : vector<2x12xf32>
    %168 = arith.subf %146, %167 : vector<2x12xf32>
    %169 = arith.mulf %160, %168 : vector<2x12xf32>
    %170 = arith.addf %167, %169 : vector<2x12xf32>
    %171 = arith.addf %147, %170 : vector<2x12xf32>
    %172 = vector.extract_strided_slice %25 {offsets = [12, 0], sizes = [2, 36], strides = [1, 1]} : vector<16x36xf32> to vector<2x36xf32>
    %cst_33 = arith.constant dense<0.000000e+00> : vector<2x36xf32>
    %173 = tpu.matmul %170, %2, %cst_33 {dimension_numbers = #tpu.dot_dimension_numbers<[1], [0], [0], [1], [0, 0, 1, 1], [], []>} : vector<2x12xf32>, vector<12x36xf32>, vector<2x36xf32> -> vector<2x36xf32>
    %174 = vector.extract_strided_slice %172 {offsets = [0, 0], sizes = [2, 24], strides = [1, 1]} : vector<2x36xf32> to vector<2x24xf32>
    %175 = vector.extract_strided_slice %173 {offsets = [0, 0], sizes = [2, 24], strides = [1, 1]} : vector<2x36xf32> to vector<2x24xf32>
    %176 = arith.addf %174, %175 : vector<2x24xf32>
    %cst_34 = arith.constant 0.000000e+00 : f32
    %177 = vector.broadcast %cst_34 : f32 to vector<2x24xf32>
    %178 = arith.subf %177, %176 : vector<2x24xf32>
    %179 = math.exp %178 : vector<2x24xf32>
    %cst_35 = arith.constant 1.000000e+00 : f32
    %180 = vector.broadcast %cst_35 : f32 to vector<2x24xf32>
    %181 = arith.addf %180, %179 : vector<2x24xf32>
    %182 = tpu.reciprocal %181 : vector<2x24xf32> -> vector<2x24xf32>
    %183 = vector.extract_strided_slice %182 {offsets = [0, 0], sizes = [2, 12], strides = [1, 1]} : vector<2x24xf32> to vector<2x12xf32>
    %184 = vector.extract_strided_slice %182 {offsets = [0, 12], sizes = [2, 12], strides = [1, 1]} : vector<2x24xf32> to vector<2x12xf32>
    %185 = vector.extract_strided_slice %172 {offsets = [0, 24], sizes = [2, 12], strides = [1, 1]} : vector<2x36xf32> to vector<2x12xf32>
    %186 = vector.extract_strided_slice %173 {offsets = [0, 24], sizes = [2, 12], strides = [1, 1]} : vector<2x36xf32> to vector<2x12xf32>
    %187 = vector.broadcast %22 : vector<1x12xf32> to vector<2x12xf32>
    %188 = arith.addf %186, %187 : vector<2x12xf32>
    %189 = arith.mulf %183, %188 : vector<2x12xf32>
    %190 = arith.addf %185, %189 : vector<2x12xf32>
    %191 = math.tanh %190 : vector<2x12xf32>
    %192 = arith.subf %170, %191 : vector<2x12xf32>
    %193 = arith.mulf %184, %192 : vector<2x12xf32>
    %194 = arith.addf %191, %193 : vector<2x12xf32>
    %195 = arith.addf %171, %194 : vector<2x12xf32>
    %196 = vector.extract_strided_slice %25 {offsets = [14, 0], sizes = [2, 36], strides = [1, 1]} : vector<16x36xf32> to vector<2x36xf32>
    %cst_36 = arith.constant dense<0.000000e+00> : vector<2x36xf32>
    %197 = tpu.matmul %194, %2, %cst_36 {dimension_numbers = #tpu.dot_dimension_numbers<[1], [0], [0], [1], [0, 0, 1, 1], [], []>} : vector<2x12xf32>, vector<12x36xf32>, vector<2x36xf32> -> vector<2x36xf32>
    %198 = vector.extract_strided_slice %196 {offsets = [0, 0], sizes = [2, 24], strides = [1, 1]} : vector<2x36xf32> to vector<2x24xf32>
    %199 = vector.extract_strided_slice %197 {offsets = [0, 0], sizes = [2, 24], strides = [1, 1]} : vector<2x36xf32> to vector<2x24xf32>
    %200 = arith.addf %198, %199 : vector<2x24xf32>
    %cst_37 = arith.constant 0.000000e+00 : f32
    %201 = vector.broadcast %cst_37 : f32 to vector<2x24xf32>
    %202 = arith.subf %201, %200 : vector<2x24xf32>
    %203 = math.exp %202 : vector<2x24xf32>
    %cst_38 = arith.constant 1.000000e+00 : f32
    %204 = vector.broadcast %cst_38 : f32 to vector<2x24xf32>
    %205 = arith.addf %204, %203 : vector<2x24xf32>
    %206 = tpu.reciprocal %205 : vector<2x24xf32> -> vector<2x24xf32>
    %207 = vector.extract_strided_slice %206 {offsets = [0, 0], sizes = [2, 12], strides = [1, 1]} : vector<2x24xf32> to vector<2x12xf32>
    %208 = vector.extract_strided_slice %206 {offsets = [0, 12], sizes = [2, 12], strides = [1, 1]} : vector<2x24xf32> to vector<2x12xf32>
    %209 = vector.extract_strided_slice %196 {offsets = [0, 24], sizes = [2, 12], strides = [1, 1]} : vector<2x36xf32> to vector<2x12xf32>
    %210 = vector.extract_strided_slice %197 {offsets = [0, 24], sizes = [2, 12], strides = [1, 1]} : vector<2x36xf32> to vector<2x12xf32>
    %211 = vector.broadcast %22 : vector<1x12xf32> to vector<2x12xf32>
    %212 = arith.addf %210, %211 : vector<2x12xf32>
    %213 = arith.mulf %207, %212 : vector<2x12xf32>
    %214 = arith.addf %209, %213 : vector<2x12xf32>
    %215 = math.tanh %214 : vector<2x12xf32>
    %216 = arith.subf %194, %215 : vector<2x12xf32>
    %217 = arith.mulf %208, %216 : vector<2x12xf32>
    %218 = arith.addf %215, %217 : vector<2x12xf32>
    %219 = arith.addf %195, %218 : vector<2x12xf32>
    %cst_39 = arith.constant dense<0.000000e+00> : vector<2x10xf32>
    %220 = tpu.matmul %219, %5, %cst_39 {dimension_numbers = #tpu.dot_dimension_numbers<[1], [0], [0], [1], [0, 0, 1, 1], [], []>} : vector<2x12xf32>, vector<12x10xf32>, vector<2x10xf32> -> vector<2x10xf32>
    %221 = vector.broadcast %6 : vector<1x10xf32> to vector<2x10xf32>
    %222 = arith.addf %220, %221 : vector<2x10xf32>
    %c0_40 = arith.constant 0 : index
    %c0_41 = arith.constant 0 : index
    %223 = vector.load %arg3[%c0_40, %c0_41] : memref<2x22xf32, #tpu.memory_space<vmem>>, vector<2x10xf32>
    tpu.vector_store %arg3[%c0_40, %c0_41], %222 {strides = array<i32>} : memref<2x22xf32, #tpu.memory_space<vmem>>, vector<2x10xf32>,
    %c0_42 = arith.constant 0 : index
    %c10 = arith.constant 10 : index
    %224 = vector.load %arg3[%c0_42, %c10] : memref<2x22xf32, #tpu.memory_space<vmem>>, vector<2x12xf32>
    tpu.vector_store %arg3[%c0_42, %c10], %218 {strides = array<i32>} : memref<2x22xf32, #tpu.memory_space<vmem>>, vector<2x12xf32>,
    return
  }
}

</mosaic_0001>

<bundles_post_ra>
// kernel: decoder_forward.1
= control target key start
LH: loop header
LB: loop body
LE: loop exit
PB: predicated region body
PF: predicated region fallthrough
CT: control target
= control target key end

     0   :  { %vm34_vm0 = vcmask 1043456   ;;  %v856_v3 = vmov 0   ;;  %vm27_vm1 = vcmask 97280   ;;  %v63_v11 = vlaneseq  ;;  %s858_s29 = smov 104   ;;  %s859_s7 = smov 24   ;;  %s1074_s2 = inlined_call_operand.vmem [shape: f32[80,36], index: 2, kind: input, shape index: {}]   ;;  %s1075_s0 = inlined_call_operand.vmem [shape: s32[16,1], index: 0, kind: input, shape index: {}]   ;;  %s1076_s1 = inlined_call_operand.vmem [shape: f32[2,12], index: 1, kind: input, shape index: {}]   ;;  %s1077_s3 = inlined_call_operand.vmem [shape: f32[2,22], index: 3, kind: output, shape index: {}]  }
   0x1   :  { %v17_v0 = vld [vmem:[%s1074_s2 + $0x18] sm:$0xf]  ;;  %v16_v1 = vld [vmem:[%s1074_s2 + $0x10] sm:$0xff]  ;;  %v14_v2 = vld [vmem:[%s1074_s2] sm:$0xff]  ;;  %804 = vset.pattern.permute.xlu0 %v856_v3  ;;  %805 = vset.pattern.permute.xlu1 %v856_v3  ;;  %vm88_vm2 = vcmask 1041408   ;;  %v857_v19 = vmov 0.0  }
   0x2   :  { %771 = vmatpush.msk.msra.mxu0 %vm34_vm0, %v17_v0  ;;  %v25_v4 = vmax.f32 %v14_v2, 0.0  ;;  %v61_v5 = vld [vmem:[%s1075_s0] sm:$0xff]  ;;  %v899_v6 = vld [vmem:[%s1074_s2 + $0x28] sm:$0xf]  ;;  %v936_v13 = vand.u32 127, %v63_v11  ;;  %vm81_vm4 = vcmask 80896  }
   0x3   :  { %66 = vperm.xlu0 %804, %v61_v5   ;;  %779 = vmatpush.msk.msra.mxu2 %vm34_vm0, %v899_v6  ;;  %v906_v7 = vld [vmem:[%s1074_s2 + $0x20] sm:$0xff]  ;;  %v15_v9 = vld [vmem:[%s1074_s2 + $0x8] sm:$0x3]  ;;  %v941_v15 = vld [vmem:[%s1074_s2 + $0x31] ss:$0 sm:$0xff]  ;;  %s860_s8 = smov 12  }
   0x4   :  { %v911_v8 = vld [vmem:[%s1076_s1] sm:$0x3]  ;;  %53 = vmatpush.msra.mxu0 %v16_v1  ;;  %781 = vmatpush.msk.msra.mxu3 %vm34_vm0, %v899_v6  ;;  %v26_v10 = vmax.f32 %v15_v9, 0.0  ;;  %v21_v21 = vld [vmem:[%s1074_s2 + $0x31] sm:$0x1]  ;;  %vm77_vm5 = vcmp.lt.s32.totalorder %v936_v13, 24 }
   0x5   :  { %772 = vmatmul.msk.f32.vlgmr.msra.gmra.mxu0 %vm27_vm1, %v25_v4  ;;  %137 = vmatpush.msra.mxu2 %v906_v7  ;;  %v20_v22 = vld [vmem:[%s1074_s2 + $0x30] sm:$0x1]  ;;  %v78_v23 = vsel %vm77_vm5, %v21_v21, 0.0  ;;  %s861_s9 = smov 116   ;;  %s862_s13 = smov 114  }
   0x6   :  { %780 = vmatmul.msk.f32.vlgmr.msra.gmra.mxu2 %vm27_vm1, %v911_v8  ;;  %210 = vmatpush.msra.mxu3 %v906_v7  ;;  %v958_v24 = vadd.f32 %v78_v23, %v20_v22 }
   0x7   :  { %783 = vmatpush.msk.msrb.mxu2 %vm34_vm0, %v899_v6  ;;  %787 = vmatpush.msk.msrb.mxu0 %vm34_vm0, %v899_v6 }
   0x8   :  { %785 = vmatpush.msk.msrb.mxu3 %vm34_vm0, %v899_v6  ;;  %v80_v25 = vperm.slane %v958_v24, 0 }
   0x9   :  { %288 = vmatpush.msrb.mxu2 %v906_v7  ;;  %444 = vmatpush.msrb.mxu0 %v906_v7 }
   0xa   :  { %366 = vmatpush.msrb.mxu3 %v906_v7 }
   0xb   :  { %791 = vmatpush.msk.msra.mxu2 %vm34_vm0, %v899_v6 }
   0xd   :  { %594 = vmatpush.msra.mxu2 %v906_v7  ;;  %773 = vmatmul.msk.f32.gmra.mxu0 %vm27_vm1, %v26_v10 }
  0x75   :  { %v67_v14 = vpop.permute.xlu0 %66 }
  0x76   :  { %vm71_vm3 = vcmp.eq.s32.totalorder %v936_v13, %v67_v14 }
  0x77   :  { %v774_v20 = vsel %vm71_vm3, 1.0, %v857_v19 }
  0x82   :  { %v55_v12 = vpop.f32.mrf.mxu0 }
  0x89   :  { %v139_v16 = vpop.f32.mrf.mxu2 }
  0x8a   :  { %v58_v17 = vpop.f32.mrf.mxu0  ;;  %v162_v18 = vadd.f32 %v941_v15, %v139_v16 }
  0x8b   :  { %776 = vmatpush.msk.msra.mxu1 %vm88_vm2, %v58_v17 }
  0x8c   :  { %164 = vrot.lane.b32.xlu0 %v162_v18, %s858_s29 }
  0x8d   :  { %107 = vmatpush.msra.mxu1 %v55_v12 }
  0x8e   :  { %777 = vmatmul.msk.f32.vlgmr.msra.gmra.mxu1 %vm81_vm4, %v774_v20 }
  0x8f   :  { %789 = vmatpush.msk.msrb.mxu1 %vm34_vm0, %v899_v6 }
  0x91   :  { %516 = vmatpush.msrb.mxu1 %v906_v7 }
  0xfe   :  { %v165_v41 = vpop.permute.xlu0 %164 }
 0x10b   :  { %v109_v26 = vpop.f32.mrf.mxu1 }
 0x10c   :  { %v963_v27 = vadd.f32 %v109_v26, %v80_v25 }
 0x10e   :  { %v142_v28 = vadd.f32 %v139_v16, %v963_v27 }
 0x110   :  { %v143_v29 = vsub.f32 0.0, %v142_v28 }
 0x112   :  { %v144_v30 = vmul.f32 1.442695, %v143_v29 }
 0x114   :  { %808 = vpow2.f32 %v144_v30 }
 0x11a   :  { %v809_v31 = vpop.eup %808 }
 0x11b   :  { %v146_v32 = vadd.f32 1.0, %v809_v31 }
 0x11d   :  { %810 = vrcp.f32 %v146_v32  ;;  %v158_v36 = vand.u32 2147483648, %v146_v32  ;;  %v156_v38 = vand.u32 2147483647, %v146_v32  ;;  %vm152_vm7 = vweird.f32 %v146_v32 }
 0x11f   :  { %v159_v40 = vor.u32 1.1754944e-38, %v158_v36  ;;  %vm157_vm9 = vcmp.eq.f32.partialorder %v156_v38, 8.507059e+37 }
 0x123   :  { %v811_v33 = vpop.eup %810 }
 0x124   :  { %v148_v34 = vmul.f32 %v811_v33, %v146_v32  ;;  %vm153_vm6 = vweird.f32 %v811_v33 }
 0x125   :  { %vm154_vm8 = vmor %vm152_vm7, %vm153_vm6 }
 0x126   :  { %v149_v35 = vsub.f32 1.0, %v148_v34 }
 0x128   :  { %v150_v37 = vmul.f32 %v811_v33, %v149_v35 }
 0x12a   :  { %v151_v39 = vadd.f32 %v811_v33, %v150_v37 }
 0x12c   :  { %v155_v42 = vsel %vm154_vm8, %v811_v33, %v151_v39 }
 0x12d   :  { %v160_v43 = vsel %vm157_vm9, %v159_v40, %v155_v42 }
 0x12e   :  { %v167_v44 = vmul.f32 %v165_v41, %v160_v43 }
 0x130   :  { %169 = vrot.lane.b32.xlu1 %v167_v44, %s859_s7 }
 0x1a2   :  { %v170_v45 = vpop.permute.xlu1 %169 }
 0x1a3   :  { %v172_v46 = vadd.f32 %v170_v45, %v963_v27 }
 0x1a5   :  { %812 = vtanh.f32 %v172_v46 }
 0x1ab   :  { %v813_v47 = vpop.eup %812 }
 0x1ac   :  { %175 = vrot.lane.b32.xlu1 %v813_v47, %s858_s29 }
 0x21e   :  { %v176_v48 = vpop.permute.xlu1 %175 }
 0x21f   :  { %v178_v49 = vsub.f32 %v911_v8, %v176_v48 }
 0x221   :  { %180 = vrot.lane.b32.xlu2 %v178_v49, %s860_s8 }
 0x27b   :  { %v181_v50 = vpop.permute.xlu2 %180 }
 0x27c   :  { %v183_v51 = vmul.f32 %v181_v50, %v160_v43 }
 0x27e   :  { %185 = vrot.lane.b32.xlu2 %v183_v51, %s860_s8 }
 0x2d8   :  { %v186_v52 = vpop.permute.xlu2 %185 }
 0x2d9   :  { %v972_v53 = vadd.f32 %v813_v47, %v186_v52 }
 0x2db   :  { %191 = vrot.lane.b32.xlu0 %v972_v53, %s858_s29 }
 0x34d   :  { %v192_v54 = vpop.permute.xlu0 %191 }
 0x34e   :  { %782 = vmatmul.msk.f32.vlgmr.msra.gmra.mxu3 %vm27_vm1, %v192_v54 }
 0x34f   :  { %793 = vmatpush.msk.msra.mxu3 %vm34_vm0, %v899_v6 }
 0x351   :  { %672 = vmatpush.msra.mxu3 %v906_v7 }
 0x3d1   :  { %v212_v55 = vpop.f32.mrf.mxu3 }
 0x3d2   :  { %v237_v56 = vadd.f32 %v941_v15, %v212_v55  ;;  %v216_v58 = vrot.slane %v212_v55, 6 }
 0x3d4   :  { %v239_v57 = vrot.slane %v237_v56, 6  ;;  %v218_v59 = vadd.f32 %v216_v58, %v963_v27 }
 0x3d6   :  { %240 = vrot.lane.b32.xlu1 %v239_v57, %s858_s29  ;;  %v219_v60 = vsub.f32 0.0, %v218_v59 }
 0x3d8   :  { %v220_v61 = vmul.f32 1.442695, %v219_v60 }
 0x3da   :  { %814 = vpow2.f32 %v220_v61 }
 0x3e0   :  { %v815_v62 = vpop.eup %814 }
 0x3e1   :  { %v222_v63 = vadd.f32 1.0, %v815_v62 }
 0x3e3   :  { %816 = vrcp.f32 %v222_v63  ;;  %v234_v5 = vand.u32 2147483648, %v222_v63  ;;  %vm228_vm11 = vweird.f32 %v222_v63  ;;  %v232_v6 = vand.u32 2147483647, %v222_v63 }
 0x3e5   :  { %v235_v8 = vor.u32 1.1754944e-38, %v234_v5  ;;  %vm233_vm13 = vcmp.eq.f32.partialorder %v232_v6, 8.507059e+37 }
 0x3e9   :  { %v817_v0 = vpop.eup %816 }
 0x3ea   :  { %v224_v1 = vmul.f32 %v817_v0, %v222_v63  ;;  %vm229_vm10 = vweird.f32 %v817_v0 }
 0x3eb   :  { %vm230_vm12 = vmor %vm228_vm11, %vm229_vm10 }
 0x3ec   :  { %v225_v2 = vsub.f32 1.0, %v224_v1 }
 0x3ee   :  { %v226_v3 = vmul.f32 %v817_v0, %v225_v2 }
 0x3f0   :  { %v227_v4 = vadd.f32 %v817_v0, %v226_v3 }
 0x3f2   :  { %v231_v7 = vsel %vm230_vm12, %v817_v0, %v227_v4 }
 0x3f3   :  { %v236_v10 = vsel %vm233_vm13, %v235_v8, %v231_v7 }
 0x448   :  { %v241_v9 = vpop.permute.xlu1 %240 }
 0x449   :  { %v243_v11 = vmul.f32 %v241_v9, %v236_v10 }
 0x44b   :  { %245 = vrot.lane.b32.xlu2 %v243_v11, %s859_s7 }
 0x4a5   :  { %v246_v12 = vpop.permute.xlu2 %245 }
 0x4a6   :  { %v248_v14 = vadd.f32 %v246_v12, %v963_v27 }
 0x4a8   :  { %818 = vtanh.f32 %v248_v14 }
 0x4ae   :  { %v819_v16 = vpop.eup %818 }
 0x4af   :  { %v251_v17 = vrot.slane %v819_v16, 2 }
 0x4b1   :  { %v253_v18 = vsub.f32 %v972_v53, %v251_v17 }
 0x4b3   :  { %v255_v20 = vrot.slane %v253_v18, 6 }
 0x4b5   :  { %256 = vrot.lane.b32.xlu0 %v255_v20, %s861_s9 }
 0x527   :  { %v257_v21 = vpop.permute.xlu0 %256 }
 0x528   :  { %v259_v22 = vmul.f32 %v257_v21, %v236_v10 }
 0x52a   :  { %261 = vrot.lane.b32.xlu1 %v259_v22, %s860_s8 }
 0x59c   :  { %v262_v23 = vpop.permute.xlu1 %261 }
 0x59d   :  { %v264_v26 = vadd.f32 %v819_v16, %v262_v23 }
 0x59f   :  { %v266_v28 = vrot.slane %v264_v26, 2 }
 0x5a1   :  { %269 = vrot.lane.b32.xlu2 %v266_v28, %s858_s29  ;;  %v268_v62 = vadd.f32 %v266_v28, %v972_v53 }
 0x5fb   :  { %v270_v29 = vpop.permute.xlu2 %269 }
 0x5fc   :  { %784 = vmatmul.msk.f32.vlgmr.msrb.gmra.mxu2 %vm27_vm1, %v270_v29 }
 0x67f   :  { %v290_v30 = vpop.f32.mrf.mxu2 }
 0x680   :  { %v315_v31 = vadd.f32 %v941_v15, %v290_v30  ;;  %v294_v33 = vrot.slane %v290_v30, 4 }
 0x682   :  { %v317_v32 = vrot.slane %v315_v31, 4  ;;  %v296_v34 = vadd.f32 %v294_v33, %v963_v27 }
 0x684   :  { %318 = vrot.lane.b32.xlu0 %v317_v32, %s858_s29  ;;  %v297_v35 = vsub.f32 0.0, %v296_v34 }
 0x686   :  { %v298_v36 = vmul.f32 1.442695, %v297_v35 }
 0x688   :  { %820 = vpow2.f32 %v298_v36  ;;  %v62_v36 = vld [vmem:[%s1075_s0 + $0x8] sm:$0xff] }
 0x68e   :  { %v821_v37 = vpop.eup %820 }
 0x68f   :  { %v300_v38 = vadd.f32 1.0, %v821_v37 }
 0x691   :  { %822 = vrcp.f32 %v300_v38  ;;  %v312_v44 = vand.u32 2147483648, %v300_v38  ;;  %vm306_vm15 = vweird.f32 %v300_v38  ;;  %v310_v45 = vand.u32 2147483647, %v300_v38 }
 0x693   :  { %v313_v47 = vor.u32 1.1754944e-38, %v312_v44  ;;  %vm311_vm3 = vcmp.eq.f32.partialorder %v310_v45, 8.507059e+37 }
 0x697   :  { %v823_v39 = vpop.eup %822 }
 0x698   :  { %v302_v40 = vmul.f32 %v823_v39, %v300_v38  ;;  %vm307_vm14 = vweird.f32 %v823_v39 }
 0x699   :  { %vm308_vm2 = vmor %vm306_vm15, %vm307_vm14 }
 0x69a   :  { %v303_v41 = vsub.f32 1.0, %v302_v40 }
 0x69c   :  { %v304_v42 = vmul.f32 %v823_v39, %v303_v41 }
 0x69e   :  { %v305_v43 = vadd.f32 %v823_v39, %v304_v42 }
 0x6a0   :  { %v309_v46 = vsel %vm308_vm2, %v823_v39, %v305_v43 }
 0x6a1   :  { %v314_v49 = vsel %vm311_vm3, %v313_v47, %v309_v46 }
 0x6f6   :  { %v319_v48 = vpop.permute.xlu0 %318 }
 0x6f7   :  { %v321_v50 = vmul.f32 %v319_v48, %v314_v49 }
 0x6f9   :  { %323 = vrot.lane.b32.xlu1 %v321_v50, %s859_s7 }
 0x76b   :  { %v324_v51 = vpop.permute.xlu1 %323 }
 0x76c   :  { %v326_v52 = vadd.f32 %v324_v51, %v963_v27 }
 0x76e   :  { %824 = vtanh.f32 %v326_v52 }
 0x774   :  { %v825_v54 = vpop.eup %824 }
 0x775   :  { %v329_v55 = vrot.slane %v825_v54, 2 }
 0x777   :  { %v331_v56 = vsub.f32 %v264_v26, %v329_v55 }
 0x779   :  { %v333_v57 = vrot.slane %v331_v56, 6 }
 0x77b   :  { %334 = vrot.lane.b32.xlu2 %v333_v57, %s861_s9 }
 0x7d5   :  { %v335_v58 = vpop.permute.xlu2 %334 }
 0x7d6   :  { %v337_v59 = vmul.f32 %v335_v58, %v314_v49 }
 0x7d8   :  { %339 = vrot.lane.b32.xlu0 %v337_v59, %s860_s8 }
 0x84a   :  { %v340_v60 = vpop.permute.xlu0 %339 }
 0x84b   :  { %v342_v61 = vadd.f32 %v825_v54, %v340_v60 }
 0x84d   :  { %v344_v63 = vrot.slane %v342_v61, 4 }
 0x84f   :  { %v346_v0 = vadd.f32 %v344_v63, %v268_v62  ;;  %347 = vrot.lane.b32.xlu1 %v344_v63, %s858_s29 }
 0x8c1   :  { %v348_v1 = vpop.permute.xlu1 %347 }
 0x8c2   :  { %786 = vmatmul.msk.f32.vlgmr.msrb.gmra.mxu3 %vm27_vm1, %v348_v1 }
 0x945   :  { %v368_v2 = vpop.f32.mrf.mxu3 }
 0x946   :  { %v393_v3 = vadd.f32 %v941_v15, %v368_v2  ;;  %v372_v5 = vrot.slane %v368_v2, 2 }
 0x948   :  { %v395_v4 = vrot.slane %v393_v3, 2  ;;  %v374_v6 = vadd.f32 %v372_v5, %v963_v27 }
 0x94a   :  { %396 = vrot.lane.b32.xlu2 %v395_v4, %s858_s29  ;;  %v375_v7 = vsub.f32 0.0, %v374_v6 }
 0x94c   :  { %v376_v8 = vmul.f32 1.442695, %v375_v7 }
 0x94e   :  { %826 = vpow2.f32 %v376_v8 }
 0x954   :  { %v827_v53 = vpop.eup %826 }
 0x955   :  { %v378_v9 = vadd.f32 1.0, %v827_v53 }
 0x957   :  { %828 = vrcp.f32 %v378_v9  ;;  %v390_v17 = vand.u32 2147483648, %v378_v9  ;;  %vm384_vm6 = vweird.f32 %v378_v9  ;;  %v388_v18 = vand.u32 2147483647, %v378_v9 }
 0x959   :  { %v391_v21 = vor.u32 1.1754944e-38, %v390_v17  ;;  %vm389_vm8 = vcmp.eq.f32.partialorder %v388_v18, 8.507059e+37 }
 0x95d   :  { %v829_v10 = vpop.eup %828 }
 0x95e   :  { %v380_v11 = vmul.f32 %v829_v10, %v378_v9  ;;  %vm385_vm5 = vweird.f32 %v829_v10 }
 0x95f   :  { %vm386_vm7 = vmor %vm384_vm6, %vm385_vm5 }
 0x960   :  { %v381_v12 = vsub.f32 1.0, %v380_v11 }
 0x962   :  { %v382_v14 = vmul.f32 %v829_v10, %v381_v12 }
 0x964   :  { %v383_v16 = vadd.f32 %v829_v10, %v382_v14 }
 0x966   :  { %v387_v20 = vsel %vm386_vm7, %v829_v10, %v383_v16 }
 0x967   :  { %v392_v23 = vsel %vm389_vm8, %v391_v21, %v387_v20 }
 0x9a4   :  { %v397_v22 = vpop.permute.xlu2 %396 }
 0x9a5   :  { %v399_v26 = vmul.f32 %v397_v22, %v392_v23 }
 0x9a7   :  { %401 = vrot.lane.b32.xlu0 %v399_v26, %s859_s7 }
 0xa19   :  { %v402_v28 = vpop.permute.xlu0 %401 }
 0xa1a   :  { %v404_v29 = vadd.f32 %v402_v28, %v963_v27 }
 0xa1c   :  { %830 = vtanh.f32 %v404_v29 }
 0xa22   :  { %v831_v30 = vpop.eup %830 }
 0xa23   :  { %v407_v31 = vrot.slane %v831_v30, 2 }
 0xa25   :  { %v409_v32 = vsub.f32 %v342_v61, %v407_v31 }
 0xa27   :  { %v411_v33 = vrot.slane %v409_v32, 6 }
 0xa29   :  { %412 = vrot.lane.b32.xlu1 %v411_v33, %s861_s9 }
 0xa31   :  { %69 = vperm.xlu1 %805, %v62_v36  }
 0xa9b   :  { %v413_v34 = vpop.permute.xlu1 %412 }
 0xa9c   :  { %v415_v35 = vmul.f32 %v413_v34, %v392_v23 }
 0xa9e   :  { %417 = vrot.lane.b32.xlu2 %v415_v35, %s860_s8 }
 0xaa3   :  { %v70_v40 = vpop.permute.xlu1 %69 }
 0xaa4   :  { %vm72_vm9 = vcmp.eq.s32.totalorder %v936_v13, %v70_v40 }
 0xaa5   :  { %v775_v41 = vsel %vm72_vm9, 1.0, %v857_v19 }
 0xaa6   :  { %778 = vmatmul.msk.f32.gmra.mxu1 %vm81_vm4, %v775_v41 }
 0xaf8   :  { %v418_v37 = vpop.permute.xlu2 %417 }
 0xaf9   :  { %v420_v38 = vadd.f32 %v831_v30, %v418_v37 }
 0xafb   :  { %v422_v39 = vrot.slane %v420_v38, 6 }
 0xafd   :  { %v1010_v27 = vadd.f32 %v422_v39, %v346_v0  ;;  %425 = vrot.lane.b32.xlu0 %v422_v39, %s858_s29 }
 0xb23   :  { %v112_v45 = vpop.f32.mrf.mxu1 }
 0xb24   :  { %v1021_v46 = vadd.f32 %v112_v45, %v80_v25 }
 0xb6f   :  { %v426_v42 = vpop.permute.xlu0 %425 }
 0xb70   :  { %788 = vmatmul.msk.f32.vlgmr.msrb.gmra.mxu0 %vm27_vm1, %v426_v42 }
 0xbed   :  { %v446_v43 = vpop.f32.mrf.mxu0 }
 0xbee   :  { %v468_v44 = vadd.f32 %v941_v15, %v446_v43  ;;  %v449_v47 = vadd.f32 %v446_v43, %v1021_v46 }
 0xbf0   :  { %470 = vrot.lane.b32.xlu2 %v468_v44, %s858_s29  ;;  %v450_v13 = vsub.f32 0.0, %v449_v47 }
 0xbf2   :  { %v451_v48 = vmul.f32 1.442695, %v450_v13 }
 0xbf4   :  { %832 = vpow2.f32 %v451_v48 }
 0xbfa   :  { %v833_v19 = vpop.eup %832 }
 0xbfb   :  { %v453_v49 = vadd.f32 1.0, %v833_v19 }
 0xbfd   :  { %834 = vrcp.f32 %v453_v49  ;;  %v465_v56 = vand.u32 2147483648, %v453_v49  ;;  %vm459_vm10 = vweird.f32 %v453_v49  ;;  %v463_v57 = vand.u32 2147483647, %v453_v49 }
 0xbff   :  { %v466_v25 = vor.u32 1.1754944e-38, %v465_v56  ;;  %vm464_vm12 = vcmp.eq.f32.partialorder %v463_v57, 8.507059e+37 }
 0xc03   :  { %v835_v50 = vpop.eup %834 }
 0xc04   :  { %v455_v51 = vmul.f32 %v835_v50, %v453_v49  ;;  %vm460_vm4 = vweird.f32 %v835_v50 }
 0xc05   :  { %vm461_vm11 = vmor %vm459_vm10, %vm460_vm4 }
 0xc06   :  { %v456_v52 = vsub.f32 1.0, %v455_v51 }
 0xc08   :  { %v457_v54 = vmul.f32 %v835_v50, %v456_v52 }
 0xc0a   :  { %v458_v55 = vadd.f32 %v835_v50, %v457_v54 }
 0xc0c   :  { %v462_v24 = vsel %vm461_vm11, %v835_v50, %v458_v55  ;;  %vm765_vm11 = vcmask 179286  }
 0xc0d   :  { %v467_v59 = vsel %vm464_vm12, %v466_v25, %v462_v24 }
 0xc4a   :  { %v471_v58 = vpop.permute.xlu2 %470 }
 0xc4b   :  { %v473_v60 = vmul.f32 %v471_v58, %v467_v59 }
 0xc4d   :  { %475 = vrot.lane.b32.xlu0 %v473_v60, %s859_s7 }
 0xcbf   :  { %v476_v61 = vpop.permute.xlu0 %475 }
 0xcc0   :  { %v478_v62 = vadd.f32 %v476_v61, %v1021_v46 }
 0xcc2   :  { %836 = vtanh.f32 %v478_v62 }
 0xcc8   :  { %v837_v63 = vpop.eup %836 }
 0xcc9   :  { %v481_v0 = vrot.slane %v837_v63, 2 }
 0xccb   :  { %v483_v1 = vsub.f32 %v420_v38, %v481_v0 }
 0xccd   :  { %v485_v2 = vrot.slane %v483_v1, 6 }
 0xccf   :  { %486 = vrot.lane.b32.xlu1 %v485_v2, %s861_s9 }
 0xd41   :  { %v487_v3 = vpop.permute.xlu1 %486 }
 0xd42   :  { %v489_v4 = vmul.f32 %v487_v3, %v467_v59 }
 0xd44   :  { %491 = vrot.lane.b32.xlu2 %v489_v4, %s860_s8 }
 0xd9e   :  { %v492_v5 = vpop.permute.xlu2 %491 }
 0xd9f   :  { %v494_v6 = vadd.f32 %v837_v63, %v492_v5 }
 0xda1   :  { %497 = vrot.lane.b32.xlu0 %v494_v6, %s858_s29  ;;  %v495_v44 = vadd.f32 %v494_v6, %v1010_v27 }
 0xe13   :  { %v498_v7 = vpop.permute.xlu0 %497 }
 0xe14   :  { %790 = vmatmul.msk.f32.vlgmr.msrb.gmra.mxu1 %vm27_vm1, %v498_v7 }
 0xe91   :  { %v518_v8 = vpop.f32.mrf.mxu1 }
 0xe92   :  { %v543_v53 = vadd.f32 %v941_v15, %v518_v8  ;;  %v522_v10 = vrot.slane %v518_v8, 6 }
 0xe94   :  { %v545_v9 = vrot.slane %v543_v53, 6  ;;  %v524_v11 = vadd.f32 %v522_v10, %v1021_v46 }
 0xe96   :  { %546 = vrot.lane.b32.xlu1 %v545_v9, %s858_s29  ;;  %v525_v12 = vsub.f32 0.0, %v524_v11 }
 0xe98   :  { %v526_v14 = vmul.f32 1.442695, %v525_v12 }
 0xe9a   :  { %838 = vpow2.f32 %v526_v14 }
 0xea0   :  { %v839_v16 = vpop.eup %838 }
 0xea1   :  { %v528_v17 = vadd.f32 1.0, %v839_v16 }
 0xea3   :  { %840 = vrcp.f32 %v528_v17  ;;  %v540_v26 = vand.u32 2147483648, %v528_v17  ;;  %vm534_vm14 = vweird.f32 %v528_v17  ;;  %v538_v28 = vand.u32 2147483647, %v528_v17 }
 0xea5   :  { %v541_v30 = vor.u32 1.1754944e-38, %v540_v26  ;;  %vm539_vm2 = vcmp.eq.f32.partialorder %v538_v28, 8.507059e+37 }
 0xea9   :  { %v841_v18 = vpop.eup %840 }
 0xeaa   :  { %v530_v20 = vmul.f32 %v841_v18, %v528_v17  ;;  %vm535_vm13 = vweird.f32 %v841_v18 }
 0xeab   :  { %vm536_vm15 = vmor %vm534_vm14, %vm535_vm13 }
 0xeac   :  { %v531_v21 = vsub.f32 1.0, %v530_v20 }
 0xeae   :  { %v532_v22 = vmul.f32 %v841_v18, %v531_v21 }
 0xeb0   :  { %v533_v23 = vadd.f32 %v841_v18, %v532_v22 }
 0xeb2   :  { %v537_v29 = vsel %vm536_vm15, %v841_v18, %v533_v23 }
 0xeb3   :  { %v542_v32 = vsel %vm539_vm2, %v541_v30, %v537_v29 }
 0xf08   :  { %v547_v31 = vpop.permute.xlu1 %546 }
 0xf09   :  { %v549_v33 = vmul.f32 %v547_v31, %v542_v32 }
 0xf0b   :  { %551 = vrot.lane.b32.xlu2 %v549_v33, %s859_s7 }
 0xf65   :  { %v552_v34 = vpop.permute.xlu2 %551 }
 0xf66   :  { %v554_v35 = vadd.f32 %v552_v34, %v1021_v46 }
 0xf68   :  { %842 = vtanh.f32 %v554_v35 }
 0xf6e   :  { %v843_v36 = vpop.eup %842 }
 0xf6f   :  { %v557_v37 = vrot.slane %v843_v36, 2 }
 0xf71   :  { %v559_v38 = vsub.f32 %v494_v6, %v557_v37 }
 0xf73   :  { %v561_v39 = vrot.slane %v559_v38, 6 }
 0xf75   :  { %562 = vrot.lane.b32.xlu0 %v561_v39, %s861_s9 }
 0xfe7   :  { %v563_v40 = vpop.permute.xlu0 %562 }
 0xfe8   :  { %v565_v41 = vmul.f32 %v563_v40, %v542_v32 }
 0xfea   :  { %567 = vrot.lane.b32.xlu1 %v565_v41, %s860_s8 }
0x105c   :  { %v568_v42 = vpop.permute.xlu1 %567 }
0x105d   :  { %v570_v43 = vadd.f32 %v843_v36, %v568_v42 }
0x105f   :  { %v572_v45 = vrot.slane %v570_v43, 2 }
0x1061   :  { %v574_v47 = vadd.f32 %v572_v45, %v495_v44  ;;  %575 = vrot.lane.b32.xlu2 %v572_v45, %s858_s29 }
0x10bb   :  { %v576_v13 = vpop.permute.xlu2 %575 }
0x10bc   :  { %792 = vmatmul.msk.f32.vlgmr.msra.gmra.mxu2 %vm27_vm1, %v576_v13 }
0x113f   :  { %v596_v48 = vpop.f32.mrf.mxu2 }
0x1140   :  { %v621_v19 = vadd.f32 %v941_v15, %v596_v48  ;;  %v600_v50 = vrot.slane %v596_v48, 4  ;;  %v23_v48 = vld [vmem:[%s1074_s2 + $0x40] sm:$0xf] }
0x1141   :  { %795 = vmatpush.msk.msra.mxu0 %vm34_vm0, %v23_v48  ;;  %vm760_vm0 = vcmask 74752  }
0x1142   :  { %v623_v49 = vrot.slane %v621_v19, 4  ;;  %v602_v51 = vadd.f32 %v600_v50, %v1021_v46 }
0x1144   :  { %624 = vrot.lane.b32.xlu0 %v623_v49, %s858_s29  ;;  %v603_v52 = vsub.f32 0.0, %v602_v51  ;;  %v22_v51 = vld [vmem:[%s1074_s2 + $0x38] sm:$0xff] }
0x1145   :  { %755 = vmatpush.msra.mxu0 %v22_v51 }
0x1146   :  { %v604_v54 = vmul.f32 1.442695, %v603_v52 }
0x1148   :  { %844 = vpow2.f32 %v604_v54  ;;  %v807_v54 = vld [vmem:[%s1074_s2 + $0x48] ss:$0 sm:$0xff] }
0x114e   :  { %v845_v27 = vpop.eup %844 }
0x114f   :  { %v606_v55 = vadd.f32 1.0, %v845_v27 }
0x1151   :  { %846 = vrcp.f32 %v606_v55  ;;  %v618_v59 = vand.u32 2147483648, %v606_v55  ;;  %vm612_vm5 = vweird.f32 %v606_v55  ;;  %v616_v60 = vand.u32 2147483647, %v606_v55 }
0x1153   :  { %v619_v62 = vor.u32 1.1754944e-38, %v618_v59  ;;  %vm617_vm7 = vcmp.eq.f32.partialorder %v616_v60, 8.507059e+37 }
0x1157   :  { %v847_v56 = vpop.eup %846 }
0x1158   :  { %v608_v57 = vmul.f32 %v847_v56, %v606_v55  ;;  %vm613_vm3 = vweird.f32 %v847_v56 }
0x1159   :  { %vm614_vm6 = vmor %vm612_vm5, %vm613_vm3 }
0x115a   :  { %v609_v24 = vsub.f32 1.0, %v608_v57 }
0x115c   :  { %v610_v25 = vmul.f32 %v847_v56, %v609_v24 }
0x115e   :  { %v611_v58 = vadd.f32 %v847_v56, %v610_v25 }
0x1160   :  { %v615_v61 = vsel %vm614_vm6, %v847_v56, %v611_v58 }
0x1161   :  { %v620_v0 = vsel %vm617_vm7, %v619_v62, %v615_v61 }
0x11b6   :  { %v625_v63 = vpop.permute.xlu0 %624 }
0x11b7   :  { %v627_v1 = vmul.f32 %v625_v63, %v620_v0 }
0x11b9   :  { %629 = vrot.lane.b32.xlu1 %v627_v1, %s859_s7 }
0x122b   :  { %v630_v2 = vpop.permute.xlu1 %629 }
0x122c   :  { %v632_v3 = vadd.f32 %v630_v2, %v1021_v46 }
0x122e   :  { %848 = vtanh.f32 %v632_v3 }
0x1234   :  { %v849_v4 = vpop.eup %848 }
0x1235   :  { %v635_v5 = vrot.slane %v849_v4, 2 }
0x1237   :  { %v637_v6 = vsub.f32 %v570_v43, %v635_v5 }
0x1239   :  { %v639_v7 = vrot.slane %v637_v6, 6 }
0x123b   :  { %640 = vrot.lane.b32.xlu2 %v639_v7, %s861_s9 }
0x1295   :  { %v641_v8 = vpop.permute.xlu2 %640 }
0x1296   :  { %v643_v53 = vmul.f32 %v641_v8, %v620_v0 }
0x1298   :  { %645 = vrot.lane.b32.xlu0 %v643_v53, %s860_s8 }
0x130a   :  { %v646_v9 = vpop.permute.xlu0 %645 }
0x130b   :  { %v648_v10 = vadd.f32 %v849_v4, %v646_v9 }
0x130d   :  { %v650_v11 = vrot.slane %v648_v10, 4 }
0x130f   :  { %v652_v12 = vadd.f32 %v650_v11, %v574_v47  ;;  %653 = vrot.lane.b32.xlu1 %v650_v11, %s858_s29 }
0x1381   :  { %v654_v14 = vpop.permute.xlu1 %653 }
0x1382   :  { %794 = vmatmul.msk.f32.vlgmr.msra.gmra.mxu3 %vm27_vm1, %v654_v14 }
0x1405   :  { %v674_v16 = vpop.f32.mrf.mxu3 }
0x1406   :  { %v699_v17 = vadd.f32 %v941_v15, %v674_v16  ;;  %v678_v20 = vrot.slane %v674_v16, 2 }
0x1408   :  { %v701_v18 = vrot.slane %v699_v17, 2  ;;  %v680_v21 = vadd.f32 %v678_v20, %v1021_v46 }
0x140a   :  { %702 = vrot.lane.b32.xlu2 %v701_v18, %s858_s29  ;;  %v681_v22 = vsub.f32 0.0, %v680_v21 }
0x140c   :  { %v682_v23 = vmul.f32 1.442695, %v681_v22 }
0x140e   :  { %850 = vpow2.f32 %v682_v23 }
0x1414   :  { %v851_v26 = vpop.eup %850 }
0x1415   :  { %v684_v28 = vadd.f32 1.0, %v851_v26 }
0x1417   :  { %852 = vrcp.f32 %v684_v28  ;;  %v696_v34 = vand.u32 2147483648, %v684_v28  ;;  %vm690_vm9 = vweird.f32 %v684_v28  ;;  %v694_v15 = vand.u32 2147483647, %v684_v28 }
0x1419   :  { %v697_v36 = vor.u32 1.1754944e-38, %v696_v34  ;;  %vm695_vm10 = vcmp.eq.f32.partialorder %v694_v15, 8.507059e+37 }
0x141d   :  { %v853_v29 = vpop.eup %852 }
0x141e   :  { %v686_v30 = vmul.f32 %v853_v29, %v684_v28  ;;  %vm691_vm8 = vweird.f32 %v853_v29 }
0x141f   :  { %vm692_vm4 = vmor %vm690_vm9, %vm691_vm8 }
0x1420   :  { %v687_v31 = vsub.f32 1.0, %v686_v30 }
0x1422   :  { %v688_v32 = vmul.f32 %v853_v29, %v687_v31 }
0x1424   :  { %v689_v33 = vadd.f32 %v853_v29, %v688_v32 }
0x1426   :  { %v693_v35 = vsel %vm692_vm4, %v853_v29, %v689_v33 }
0x1427   :  { %v698_v38 = vsel %vm695_vm10, %v697_v36, %v693_v35 }
0x1464   :  { %v703_v37 = vpop.permute.xlu2 %702 }
0x1465   :  { %v705_v39 = vmul.f32 %v703_v37, %v698_v38 }
0x1467   :  { %707 = vrot.lane.b32.xlu0 %v705_v39, %s859_s7 }
0x14d9   :  { %v708_v40 = vpop.permute.xlu0 %707 }
0x14da   :  { %v710_v41 = vadd.f32 %v708_v40, %v1021_v46 }
0x14dc   :  { %854 = vtanh.f32 %v710_v41 }
0x14e2   :  { %v855_v42 = vpop.eup %854 }
0x14e3   :  { %v713_v43 = vrot.slane %v855_v42, 2 }
0x14e5   :  { %v715_v44 = vsub.f32 %v648_v10, %v713_v43 }
0x14e7   :  { %v717_v45 = vrot.slane %v715_v44, 6 }
0x14e9   :  { %718 = vrot.lane.b32.xlu1 %v717_v45, %s861_s9 }
0x155b   :  { %v719_v47 = vpop.permute.xlu1 %718 }
0x155c   :  { %v721_v13 = vmul.f32 %v719_v47, %v698_v38 }
0x155e   :  { %723 = vrot.lane.b32.xlu2 %v721_v13, %s860_s8 }
0x15b8   :  { %v724_v19 = vpop.permute.xlu2 %723 }
0x15b9   :  { %v726_v49 = vadd.f32 %v855_v42, %v724_v19 }
0x15bb   :  { %v728_v46 = vrot.slane %v726_v49, 6  ;;  %762 = vrot.lane.b32.xlu1 %v726_v49, %s862_s13 }
0x15bd   :  { %v730_v50 = vadd.f32 %v728_v46, %v652_v12 }
0x15bf   :  { %733 = vrot.lane.b32.xlu0 %v730_v50, %s858_s29 }
0x162d   :  { %v763_v56 = vpop.permute.xlu1 %762 }
0x1631   :  { %v734_v52 = vpop.permute.xlu0 %733 }
0x1632   :  { %796 = vmatmul.msk.f32.vlgmr.msra.gmra.mxu0 %vm27_vm1, %v734_v52 }
0x16af   :  { %v757_v27 = vpop.f32.mrf.mxu0 }
0x16b0   :  { %v758_v55 = vadd.f32 %v807_v54, %v757_v27 }
0x16b2   :  { %761 = vst.msk [vmem:[%s1077_s3] sm:$0x3] %vm760_vm0, %v758_v55 }
0x16b3   :  { %766 = vst.msk [vmem:[%s1077_s3 - $0x6] sm:$0xc0] %vm765_vm11, %v763_v56 }

</bundles_post_ra>
